<compile_context>
chip_gen: v6e
topology: v6e:2x2x1
jax: 0.10.0
libtpu: 0.0.40
codegen_flags: <defaults>
</compile_context>

<pallas_src>
import jax
import jax.numpy as jnp
from jax.experimental import pallas as pl
from jax.experimental.pallas import tpu as pltpu


def _mlp_kernel(x_ref, w1_ref, b1_ref, w2_ref, b2_ref, o_ref):
    # Hidden layer: MXU matmul with f32 accumulation.
    h = jnp.dot(x_ref[...], w1_ref[...], preferred_element_type=jnp.float32)
    # Bias + ReLU stay in f32 on the VPU (v5e has no native bf16 VPU).
    h = jnp.maximum(h + b1_ref[...], 0.0)

    # Output layer: cast activations back to the matmul input dtype for the MXU.
    z = jnp.dot(h.astype(w2_ref.dtype), w2_ref[...],
                preferred_element_type=jnp.float32)
    z = z + b2_ref[...]
    o_ref[...] = (100.0 * jax.nn.sigmoid(z)).astype(o_ref.dtype)


def network_forward(x, w1, b1, w2, b2, *,
                    compute_dtype=jnp.float32, tile_m=256):
    """x: (B, F); w1: (F, H); b1: (1, H); w2: (H, O); b2: (1, O) → (B, O) f32.

    compute_dtype: dtype fed to the MXU (jnp.bfloat16 recommended at scale);
                   accumulation and elementwise math are always f32.
    tile_m:        batch tile (256 for v6e/v7x; use 128 on v5e).
    """
    B, F = x.shape
    H = w1.shape[1]
    O = w2.shape[1]

    # Lane-dense output: pad the output feature dim up to a multiple of 128 so
    # stores use full unmasked vst instead of masked partial stores.
    O_pad = ((O + 127) // 128) * 128
    if O_pad != O:
        w2 = jnp.pad(w2, ((0, 0), (0, O_pad - O)))
        b2 = jnp.pad(b2, ((0, 0), (0, O_pad - O)))

    # Matmul operands in compute_dtype (e.g. bf16), biases in f32.
    xc = x.astype(compute_dtype)
    w1c = w1.astype(compute_dtype)
    w2c = w2.astype(compute_dtype)
    b1f = b1.astype(jnp.float32)
    b2f = b2.astype(jnp.float32)

    if B <= tile_m:
        # Tiny batch: no grid, no pipeline — single shot, all operands in VMEM.
        out = pl.pallas_call(
            _mlp_kernel,
            out_shape=jax.ShapeDtypeStruct((B, O_pad), jnp.float32),
            in_specs=[pl.BlockSpec(memory_space=pltpu.MemorySpace.VMEM)] * 5,
            out_specs=pl.BlockSpec(memory_space=pltpu.MemorySpace.VMEM),
        )(xc, w1c, b1f, w2c, b2f)
    else:
        # Batch-tiled path: stream x / y per tile, keep weights resident.
        n_tiles = pl.cdiv(B, tile_m)
        B_pad = n_tiles * tile_m
        if B_pad != B:
            xc = jnp.pad(xc, ((0, B_pad - B), (0, 0)))
        out = pl.pallas_call(
            _mlp_kernel,
            out_shape=jax.ShapeDtypeStruct((B_pad, O_pad), jnp.float32),
            grid=(n_tiles,),
            in_specs=[
                pl.BlockSpec((tile_m, F), lambda i: (i, 0)),   # stream x
                pl.BlockSpec((F, H), lambda i: (0, 0)),        # resident W1
                pl.BlockSpec((1, H), lambda i: (0, 0)),        # resident b1
                pl.BlockSpec((H, O_pad), lambda i: (0, 0)),    # resident W2
                pl.BlockSpec((1, O_pad), lambda i: (0, 0)),    # resident b2
            ],
            out_specs=pl.BlockSpec((tile_m, O_pad), lambda i: (i, 0)),
            compiler_params=pltpu.CompilerParams(
                # Independent batch tiles → shard across v7x's 2 TensorCores.
                dimension_semantics=("parallel",),
            ),
        )(xc, w1c, b1f, w2c, b2f)
        out = out[:B]

    return out[:, :O]


if __name__ == "__main__":
    # Shapes implied by the module: n_feature -> n_hidden -> n_output.
    batch, n_feature, n_hidden, n_output = 8, 32, 64, 16

    key = jax.random.PRNGKey(0)
    kx, k1, k2, k3, k4, kx2 = jax.random.split(key, 6)

    x = jax.random.normal(kx, (batch, n_feature), dtype=jnp.float32)

    # Deterministic parameter init (scaled like torch's default uniform init).
    w1 = jax.random.uniform(k1, (n_feature, n_hidden), jnp.float32,
                            -1.0, 1.0) / jnp.sqrt(n_feature)
    b1 = jax.random.uniform(k2, (1, n_hidden), jnp.float32,
                            -1.0, 1.0) / jnp.sqrt(n_feature)
    w2 = jax.random.uniform(k3, (n_hidden, n_output), jnp.float32,
                            -1.0, 1.0) / jnp.sqrt(n_hidden)
    b2 = jax.random.uniform(k4, (1, n_output), jnp.float32,
                            -1.0, 1.0) / jnp.sqrt(n_hidden)

    # --- Path 1: tiny batch, grid-less, exact f32 check -------------------
    out = network_forward(x, w1, b1, w2, b2, compute_dtype=jnp.float32)
    out = jax.block_until_ready(out)

    ref = 100.0 * jax.nn.sigmoid(
        jnp.maximum(x @ w1 + b1, 0.0) @ w2 + b2)
    assert out.shape == (batch, n_output)
    assert jnp.allclose(out, ref, atol=1e-4, rtol=1e-4)

    # --- Path 2: batch-tiled, bf16 MXU inputs (the "scaled" configuration) --
    big_batch = 512
    xL = jax.random.normal(kx2, (big_batch, n_feature), dtype=jnp.float32)
    out2 = network_forward(xL, w1, b1, w2, b2,
                           compute_dtype=jnp.bfloat16, tile_m=256)
    out2 = jax.block_until_ready(out2)

    # Matching-precision reference (same bf16 MXU inputs, f32 accumulation).
    xb = xL.astype(jnp.bfloat16)
    w1b = w1.astype(jnp.bfloat16)
    w2b = w2.astype(jnp.bfloat16)
    h_ref = jnp.maximum(
        jnp.dot(xb, w1b, preferred_element_type=jnp.float32) + b1, 0.0)
    ref2 = 100.0 * jax.nn.sigmoid(
        jnp.dot(h_ref.astype(jnp.bfloat16), w2b,
                preferred_element_type=jnp.float32) + b2)
    assert out2.shape == (big_batch, n_output)
    assert jnp.allclose(out2, ref2, atol=1e-2, rtol=1e-2)

    print("KERNEL_OK")
</pallas_src>

<mosaic_0001>
module attributes {stable_mosaic.version = 11 : i64} {
  func.func @_mlp_kernel(%arg0: memref<8x32xf32, #tpu.memory_space<vmem>>, %arg1: memref<32x64xf32, #tpu.memory_space<vmem>>, %arg2: memref<1x64xf32, #tpu.memory_space<vmem>>, %arg3: memref<64x128xf32, #tpu.memory_space<vmem>>, %arg4: memref<1x128xf32, #tpu.memory_space<vmem>>, %arg5: memref<8x128xf32, #tpu.memory_space<vmem>>) attributes {dimension_semantics = [], scalar_prefetch = 0 : i64, scratch_operands = 0 : i64, tpu.core_type = #tpu.core_type<tc>} {
    %c0 = arith.constant 0 : index
    %c0_0 = arith.constant 0 : index
    %0 = vector.load %arg0[%c0, %c0_0] : memref<8x32xf32, #tpu.memory_space<vmem>>, vector<8x32xf32>
    %c0_1 = arith.constant 0 : index
    %c0_2 = arith.constant 0 : index
    %1 = vector.load %arg1[%c0_1, %c0_2] : memref<32x64xf32, #tpu.memory_space<vmem>>, vector<32x64xf32>
    %cst = arith.constant dense<0.000000e+00> : vector<8x64xf32>
    %2 = tpu.matmul %0, %1, %cst {dimension_numbers = #tpu.dot_dimension_numbers<[1], [0], [0], [1], [0, 0, 1, 1], [], []>} : vector<8x32xf32>, vector<32x64xf32>, vector<8x64xf32> -> vector<8x64xf32>
    %c0_3 = arith.constant 0 : index
    %c0_4 = arith.constant 0 : index
    %3 = vector.load %arg2[%c0_3, %c0_4] : memref<1x64xf32, #tpu.memory_space<vmem>>, vector<1x64xf32>
    %4 = vector.broadcast %3 : vector<1x64xf32> to vector<8x64xf32>
    %5 = arith.addf %2, %4 : vector<8x64xf32>
    %cst_5 = arith.constant 0.000000e+00 : f32
    %6 = vector.broadcast %cst_5 : f32 to vector<8x64xf32>
    %7 = arith.maximumf %5, %6 : vector<8x64xf32>
    %c0_6 = arith.constant 0 : index
    %c0_7 = arith.constant 0 : index
    %8 = vector.load %arg3[%c0_6, %c0_7] : memref<64x128xf32, #tpu.memory_space<vmem>>, vector<64x128xf32>
    %cst_8 = arith.constant dense<0.000000e+00> : vector<8x128xf32>
    %9 = tpu.matmul %7, %8, %cst_8 {dimension_numbers = #tpu.dot_dimension_numbers<[1], [0], [0], [1], [0, 0, 1, 1], [], []>} : vector<8x64xf32>, vector<64x128xf32>, vector<8x128xf32> -> vector<8x128xf32>
    %c0_9 = arith.constant 0 : index
    %c0_10 = arith.constant 0 : index
    %10 = vector.load %arg4[%c0_9, %c0_10] : memref<1x128xf32, #tpu.memory_space<vmem>>, vector<1x128xf32>
    %11 = vector.broadcast %10 : vector<1x128xf32> to vector<8x128xf32>
    %12 = arith.addf %9, %11 : vector<8x128xf32>
    %13 = arith.negf %12 : vector<8x128xf32>
    %14 = math.exp %13 : vector<8x128xf32>
    %cst_11 = arith.constant 1.000000e+00 : f32
    %15 = vector.broadcast %cst_11 : f32 to vector<8x128xf32>
    %16 = arith.addf %15, %14 : vector<8x128xf32>
    %17 = arith.divf %15, %16 : vector<8x128xf32>
    %cst_12 = arith.constant 1.000000e+02 : f32
    %18 = vector.broadcast %cst_12 : f32 to vector<8x128xf32>
    %19 = arith.mulf %18, %17 : vector<8x128xf32>
    %c0_13 = arith.constant 0 : index
    %c0_14 = arith.constant 0 : index
    %20 = vector.load %arg5[%c0_13, %c0_14] : memref<8x128xf32, #tpu.memory_space<vmem>>, vector<8x128xf32>
    tpu.vector_store %arg5[%c0_13, %c0_14], %19 {strides = array<i32>} : memref<8x128xf32, #tpu.memory_space<vmem>>, vector<8x128xf32>,
    return
  }
}

</mosaic_0001>

<bundles_post_ra>
// kernel: tpu_custom_call.1
= control target key start
LH: loop header
LB: loop body
LE: loop exit
PB: predicated region body
PF: predicated region fallthrough
CT: control target
= control target key end

     0   :  { %10 = vsyncpa [#allocation3], 0  ;;  %s463_s0 = inlined_call_operand.hbm [shape: f32[8,32], index: 0, kind: input, shape index: {}]   ;;  %s464_s1 = inlined_call_operand.hbm [shape: f32[32,64], index: 1, kind: input, shape index: {}]   ;;  %s465_s2 = inlined_call_operand.vmem [shape: f32[1,64], index: 2, kind: input, shape index: {}]   ;;  %s466_s3 = inlined_call_operand.hbm [shape: f32[64,128], index: 3, kind: input, shape index: {}]   ;;  %s467_s4 = inlined_call_operand.vmem [shape: f32[1,128], index: 4, kind: input, shape index: {}]   ;;  %s468_s5 = inlined_call_operand.hbm [shape: f32[8,128], index: 5, kind: output, shape index: {}]  }
   0x1   :  { %11 = vsyncpa [#allocation6], 0 }
   0x2   :  { %12 = vsyncpa [#allocation4], 0  ;;  %s407_s18 = smov [#allocation5]  }
   0x3   :  { %s28_s19 = sshll.u32 %s407_s18, 4  ;;  %s29_s19 = int_to_ptr.vmem [resolvable:$true] %s28_s19 }
   0x4   :  { %s329_s20 = scalar_lea.vmem %s29_s19, 512  ;;  %p334_p1 = scmp.lt.s32.totalorder %s29_s19, %s29_s19 }
   0x5   :  { %p330_p0 = scmp.ne.s32.totalorder %s29_s19, %s329_s20  ;;  %p335_p2 = scmp.lt.s32.totalorder %s329_s20, %s329_s20 }
   0x7   :  { %p336_p3 = por %p335_p2, %p334_p1 }
   0x9   :  { %p337_p4 = pnand %p336_p3, %p330_p0 }
   0xb   :  { %340 = shalt.err (!%p337_p4)
}
   0xc   :  { %s408_s21 = smov 128   ;;  %s409_s22 = smov 8  }
   0xd   :  { %34 = dma.hbm_to_vmem [thread:$0]  %s464_s1, 512, %s29_s19, [#allocation6], %s408_s21, %s408_s21, %s409_s22  }
   0xe   :  { %s410_s25 = smov [#allocation2]   ;;  %s411_s27 = smov [#allocation7]  }
   0xf   :  { %s19_s26 = sshll.u32 %s410_s25, 4  ;;  %s42_s28 = sshll.u32 %s411_s27, 4  ;;  %s20_s26 = int_to_ptr.vmem [resolvable:$true] %s19_s26  ;;  %s43_s28 = int_to_ptr.vmem [resolvable:$true] %s42_s28 }
  0x10   :  { %s349_s29 = scalar_lea.vmem %s20_s26, 128  ;;  %p354_p6 = scmp.lt.s32.totalorder %s20_s26, %s20_s26 }
  0x11   :  { %p350_p5 = scmp.ne.s32.totalorder %s20_s26, %s349_s29  ;;  %p355_p7 = scmp.lt.s32.totalorder %s349_s29, %s349_s29 }
  0x13   :  { %p356_p8 = por %p355_p7, %p354_p6 }
  0x15   :  { %p357_p9 = pnand %p356_p8, %p350_p5 }
  0x17   :  { %360 = shalt.err (!%p357_p9)
}
  0x18   :  { %22 = dma.hbm_to_vmem [thread:$0]  %s463_s0, 128, %s20_s26, [#allocation3]  }
  0x19   :  { %s369_s7 = scalar_lea.vmem %s43_s28, 1024  ;;  %p374_p11 = scmp.lt.s32.totalorder %s43_s28, %s43_s28 }
  0x1a   :  { %p370_p10 = scmp.ne.s32.totalorder %s43_s28, %s369_s7  ;;  %p375_p12 = scmp.lt.s32.totalorder %s369_s7, %s369_s7 }
  0x1c   :  { %p376_p13 = por %p375_p12, %p374_p11 }
  0x1e   :  { %p377_p0 = pnand %p376_p13, %p370_p10 }
  0x20   :  { %380 = shalt.err (!%p377_p0)
}
  0x21   :  { %48 = dma.hbm_to_vmem [thread:$0]  %s466_s3, 1024, %s43_s28, [#allocation6], %s408_s21, %s408_s21, %s409_s22  }
  0x22   :  { %401 = dma.done.wait [#allocation3], 128  }
  0x23   :  { %402 = vsyncadd [#allocation3], 4294967168 }
  0x24   :  { %403 = dma.done.wait [#allocation6], 1536  }
  0x25   :  { %404 = vsyncadd [#allocation6], 4294965760  ;;  %v412_v0 = vmov 0.0   ;;  %vm413_vm0 = vmmov 0   ;;  %v64_v1 = vld [vmem:[#allocation5 + $0x18] sm:$0xff]  ;;  %v63_v2 = vld [vmem:[#allocation5 + $0x10] sm:$0xff] }
  0x26   :  { %279 = vmatprep.subr.mxu0 %v412_v0  ;;  %287 = vmatprep.mubr.msk.f32.mxu0 %vm413_vm0, %v412_v0  ;;  %v154_v3 = vld [vmem:[#allocation7 + $0x38] sm:$0xff]  ;;  %v62_v4 = vld [vmem:[#allocation5 + $0x8] sm:$0xff]  ;;  %v153_v5 = vld [vmem:[#allocation7 + $0x30] sm:$0xff]  ;;  %vm72_vm1 = vcmask 261120   ;;  %vm162_vm2 = vcmask 523264   ;;  %s414_s11 = smov [#allocation8]  }
  0x27   :  { %290 = vmatprep.subr.mxu1 %v412_v0  ;;  %306 = vmatprep.mubr.msk.f32.mxu1 %vm413_vm0, %v412_v0  ;;  %v152_v6 = vld [vmem:[#allocation7 + $0x28] sm:$0xff]  ;;  %v61_v7 = vld [vmem:[#allocation5] sm:$0xff]  ;;  %v60_v8 = vld [vmem:[#allocation2] sm:$0xff] }
  0x28   :  { %280 = vmatpush3.msra.mxu0 %v64_v1  ;;  %291 = vmatpush3.msra.mxu1 %v154_v3  ;;  %v151_v9 = vld [vmem:[#allocation7 + $0x20] sm:$0xff]  ;;  %v150_v10 = vld [vmem:[#allocation7 + $0x18] sm:$0xff]  ;;  %v149_v11 = vld [vmem:[#allocation7 + $0x10] sm:$0xff] }
  0x29   :  { %281 = vmatprep.subr.mxu0 %v412_v0  ;;  %292 = vmatprep.subr.mxu1 %v412_v0  ;;  %v148_v12 = vld [vmem:[#allocation7 + $0x8] sm:$0xff]  ;;  %v147_v13 = vld [vmem:[#allocation7] sm:$0xff]  ;;  %v260_v14 = vld [vmem:[%s465_s2] ss:$0 sm:$0xff]  ;;  %s250_s2 = sshll.u32 %s414_s11, 4  ;;  %s251_s2 = int_to_ptr.vmem [resolvable:$true] %s250_s2 }
  0x2a   :  { %282 = vmatpush3.msra.mxu0 %v63_v2  ;;  %293 = vmatpush3.msra.mxu1 %v153_v5  ;;  %v262_v19 = vld [vmem:[%s467_s4] ss:$0 sm:$0xff]  ;;  %s381_s12 = scalar_lea.vmem %s251_s2, 128  ;;  %p386_p2 = scmp.lt.s32.totalorder %s251_s2, %s251_s2 }
  0x2b   :  { %283 = vmatprep.subr.mxu0 %v412_v0  ;;  %294 = vmatprep.subr.mxu1 %v412_v0  ;;  %p382_p1 = scmp.ne.s32.totalorder %s251_s2, %s381_s12  ;;  %p387_p3 = scmp.lt.s32.totalorder %s381_s12, %s381_s12 }
  0x2c   :  { %284 = vmatpush3.msra.mxu0 %v62_v4  ;;  %295 = vmatpush3.msra.mxu1 %v152_v6 }
  0x2d   :  { %285 = vmatprep.subr.mxu0 %v412_v0  ;;  %296 = vmatprep.subr.mxu1 %v412_v0  ;;  %p388_p4 = por %p387_p3, %p386_p2 }
  0x2e   :  { %286 = vmatpush3.msra.mxu0 %v61_v7  ;;  %297 = vmatpush3.msra.mxu1 %v151_v9 }
  0x2f   :  { %288 = vmatmul.mubr.msk.f32.vlgmr.msra.gmra.mxu0 %vm72_vm1, %v60_v8  ;;  %298 = vmatprep.subr.mxu1 %v412_v0  ;;  %p389_p5 = pnand %p388_p4, %p382_p1 }
  0x30   :  { %299 = vmatpush3.msra.mxu1 %v150_v10 }
  0x31   :  { %300 = vmatprep.subr.mxu1 %v412_v0 }
  0x32   :  { %301 = vmatpush3.msra.mxu1 %v149_v11 }
  0x33   :  { %302 = vmatprep.subr.mxu1 %v412_v0 }
  0x34   :  { %303 = vmatpush3.msra.mxu1 %v148_v12 }
  0x35   :  { %304 = vmatprep.subr.mxu1 %v412_v0 }
  0x36   :  { %305 = vmatpush3.msra.mxu1 %v147_v13 }
  0xef   :  { %v142_v15 = vpop.f32.mrf.mxu0 }
  0xf0   :  { %v143_v16 = vadd.f32 %v260_v14, %v142_v15 }
  0xf1   :  { %v289_v17 = vpop.f32.mrf.mxu0 }
  0xf2   :  { %v146_v18 = vmax.f32 %v143_v16, 0.0 }
  0xf4   :  { %307 = vmatmul.mubr.msk.f32.vlgmr.msra.gmra.mxu1 %vm162_vm2, %v146_v18 }
 0x1b4   :  { %v232_v20 = vpop.f32.mrf.mxu1 }
 0x1b5   :  { %v233_v21 = vadd.f32 %v262_v19, %v232_v20 }
 0x1b6   :  { %v308_v22 = vpop.f32.mrf.mxu1 }
 0x1b7   :  { %v264_v23 = vmul.f32 -1.442695, %v233_v21 }
 0x1b9   :  { %317 = vpow2.f32 %v264_v23 }
 0x1c6   :  { %v318_v24 = vpop.eup %317 }
 0x1c7   :  { %v239_v25 = vadd.f32 1.0, %v318_v24 }
 0x1c9   :  { %319 = vrcp.f32 %v239_v25 }
 0x1d6   :  { %v320_v26 = vpop.eup %319 }
 0x1d7   :  { %v242_v27 = vmul.f32 100.0, %v320_v26 }
 0x1d9   :  { %243 = vst [vmem:[#allocation8] sm:$0xff] %v242_v27 }
 0x1da   :  { %392 = shalt.err (!%p389_p5)
}
 0x1db   :  { %253 = dma.vmem_to_hbm [thread:$0]  %s251_s2, 128, %s468_s5, [#allocation4]  }
 0x1dc   :  { %405 = dma.done.wait [#allocation4], 128  }
 0x1dd   :  { %406 = vsyncadd [#allocation4], 4294967168 }
 0x1de   :  { %257 = vsyncpa [#allocation3], 1 }
 0x1df   :  { %258 = vsyncpa [#allocation6], 1 }
 0x1e0   :  { %259 = vsyncpa [#allocation4], 1 }

</bundles_post_ra>
